<compile_context>
chip_gen: v7x
topology: tpu7x:2x2x1
jax: 0.10.0
libtpu: 0.0.40
codegen_flags: <defaults>
</compile_context>

<pallas_src>
import jax
import jax.numpy as jnp
from jax.experimental import pallas as pl
from jax.experimental.pallas import tpu as pltpu

D_IN, D_H1, D_H2, D_OUT = 9, 128, 64, 4


def _round_up(n, m):
    return ((n + m - 1) // m) * m


def _mlp_kernel(x_ref, w1_ref, b1_ref, w2_ref, b2_ref, w3_ref, b3_ref, o_ref):
    # x_ref: [TB, 9] f32; cast to the compute dtype (taken from w1) in-kernel.
    x = x_ref[...].astype(w1_ref.dtype)
    h1 = jnp.dot(x, w1_ref[...], preferred_element_type=jnp.float32) + b1_ref[...]
    h1 = jnp.maximum(h1, 0.0)                                   # ReLU [TB, 128]
    # Dropout(0.3) -> identity in eval mode.
    # TODO(synk): training-mode dropout (stateful PRNG mask) not implemented.
    h2 = jnp.dot(h1.astype(w2_ref.dtype), w2_ref[...],
                 preferred_element_type=jnp.float32) + b2_ref[...]
    h2 = jnp.maximum(h2, 0.0)                                   # ReLU [TB, 64]
    # Narrow final store: (TB, 4) f32 block (few masked lane stores, negligible
    # next to the DMA bytes saved versus a 128-wide padded output).
    o_ref[...] = (jnp.dot(h2.astype(w3_ref.dtype), w3_ref[...],
                          preferred_element_type=jnp.float32) + b3_ref[...])


def prepare_params(params, *, use_bf16=True):
    """One-time weight prep (hoisted out of the per-call forward wrapper)."""
    cd = jnp.bfloat16 if use_bf16 else jnp.float32
    return {
        "w1": params["w1"].astype(cd),   # [9, 128]
        "w2": params["w2"].astype(cd),   # [128, 64]
        "w3": params["w3"].astype(cd),   # [64, 4]
        "b1": params["b1"].astype(jnp.float32),   # [1, 128]
        "b2": params["b2"].astype(jnp.float32),   # [1, 64]
        "b3": params["b3"].astype(jnp.float32),   # [1, 4]
    }


def accident_severity_forward(x, prepared, *, batch_tile=4096):
    """x: [B, 9] float32, prepared: output of prepare_params -> [B, 4] f32 logits."""
    B = x.shape[0]

    # Tile selection: grid = cdiv(B, batch_tile); pad each tile only to a
    # multiple of 256 rows (sublane-friendly), not to a full batch_tile. Force
    # >= 2 tiles at moderate batch so both v7x TensorCores get a share.
    num_tiles = max(1, pl.cdiv(B, batch_tile))
    if num_tiles == 1 and B >= 1024:
        num_tiles = 2
    TB = _round_up(pl.cdiv(B, num_tiles), 256)
    B_pad = TB * num_tiles

    x_p = x if B_pad == B else jnp.pad(x, ((0, B_pad - B), (0, 0)))

    out = pl.pallas_call(
        _mlp_kernel,
        out_shape=jax.ShapeDtypeStruct((B_pad, D_OUT), jnp.float32),
        grid=(num_tiles,),
        in_specs=[
            pl.BlockSpec((TB, D_IN), lambda i: (i, 0)),     # x: tiled over batch, unpadded
            pl.BlockSpec((D_IN, D_H1), lambda i: (0, 0)),   # w1: resident
            pl.BlockSpec((1, D_H1), lambda i: (0, 0)),      # b1: resident
            pl.BlockSpec((D_H1, D_H2), lambda i: (0, 0)),   # w2: resident
            pl.BlockSpec((1, D_H2), lambda i: (0, 0)),      # b2: resident
            pl.BlockSpec((D_H2, D_OUT), lambda i: (0, 0)),  # w3: resident, natural [64,4]
            pl.BlockSpec((1, D_OUT), lambda i: (0, 0)),     # b3: resident, natural [1,4]
        ],
        out_specs=pl.BlockSpec((TB, D_OUT), lambda i: (i, 0)),
        compiler_params=pltpu.CompilerParams(
            dimension_semantics=("parallel",),
            vmem_limit_bytes=48 * 1024 * 1024,
        ),
    )(x_p, prepared["w1"], prepared["b1"], prepared["w2"], prepared["b2"],
      prepared["w3"], prepared["b3"])

    return out if B_pad == B else out[:B]


# ----------------------------- init & reference ------------------------------

def _xavier_uniform(key, fan_in, fan_out):
    limit = jnp.sqrt(6.0 / (fan_in + fan_out))
    return jax.random.uniform(key, (fan_in, fan_out), jnp.float32, -limit, limit)


def _linear_default(key, fan_in, fan_out):
    limit = 1.0 / jnp.sqrt(jnp.float32(fan_in))
    return jax.random.uniform(key, (fan_in, fan_out), jnp.float32, -limit, limit)


def _bias_default(key, fan_in, fan_out):
    limit = 1.0 / jnp.sqrt(jnp.float32(fan_in))
    return jax.random.uniform(key, (1, fan_out), jnp.float32, -limit, limit)


def init_params(key):
    k = jax.random.split(key, 6)
    return {
        "w1": _xavier_uniform(k[0], D_IN, D_H1),   # nn.init.xavier_uniform_
        "b1": _bias_default(k[1], D_IN, D_H1),
        "w2": _xavier_uniform(k[2], D_H1, D_H2),   # nn.init.xavier_uniform_
        "b2": _bias_default(k[3], D_H1, D_H2),
        "w3": _linear_default(k[4], D_H2, D_OUT),  # fc3 default PyTorch init
        "b3": _bias_default(k[5], D_H2, D_OUT),
    }


def reference_forward(x, p, dtype=jnp.float32):
    xd = x.astype(dtype)
    w1, w2, w3 = p["w1"].astype(dtype), p["w2"].astype(dtype), p["w3"].astype(dtype)
    h1 = jnp.maximum(jnp.dot(xd, w1, preferred_element_type=jnp.float32) + p["b1"], 0.0)
    h2 = jnp.maximum(jnp.dot(h1.astype(dtype), w2,
                             preferred_element_type=jnp.float32) + p["b2"], 0.0)
    return jnp.dot(h2.astype(dtype), w3, preferred_element_type=jnp.float32) + p["b3"]


if __name__ == "__main__":
    key = jax.random.PRNGKey(0)
    k_param, k_x1, k_x2 = jax.random.split(key, 3)
    params = init_params(k_param)
    params_f32 = prepare_params(params, use_bf16=False)   # prepped once, reused
    params_bf16 = prepare_params(params, use_bf16=True)

    # Small-shape check (B=8): f32 path.
    x_small = jax.random.normal(k_x1, (8, D_IN), jnp.float32)
    out_f32 = jax.block_until_ready(accident_severity_forward(x_small, params_f32))
    ref_f32 = reference_forward(x_small, params, jnp.float32)
    assert out_f32.shape == (8, D_OUT), out_f32.shape
    assert jnp.allclose(out_f32, ref_f32, atol=1e-4, rtol=1e-4), "f32 mismatch"

    # bf16 path (default), compared against a bf16-matched reference.
    out_bf16 = jax.block_until_ready(accident_severity_forward(x_small, params_bf16))
    ref_bf16 = reference_forward(x_small, params, jnp.bfloat16)
    assert jnp.allclose(out_bf16, ref_bf16, atol=2e-2, rtol=2e-2), "bf16 mismatch"

    # Multi-tile grid + ragged batch (exercises padding-to-256 and pipelining).
    x_big = jax.random.normal(k_x2, (600, D_IN), jnp.float32)
    out_big = jax.block_until_ready(
        accident_severity_forward(x_big, params_f32, batch_tile=256))
    ref_big = reference_forward(x_big, params, jnp.float32)
    assert out_big.shape == (600, D_OUT), out_big.shape
    assert jnp.allclose(out_big, ref_big, atol=1e-4, rtol=1e-4), "tiled mismatch"

    print("KERNEL_OK")
</pallas_src>

<mosaic_0001>
module attributes {stable_mosaic.version = 11 : i64} {
  func.func @_mlp_kernel(%arg0: i32, %arg1: memref<256x9xf32, #tpu.memory_space<vmem>>, %arg2: memref<9x128xf32, #tpu.memory_space<vmem>>, %arg3: memref<1x128xf32, #tpu.memory_space<vmem>>, %arg4: memref<128x64xf32, #tpu.memory_space<vmem>>, %arg5: memref<1x64xf32, #tpu.memory_space<vmem>>, %arg6: memref<64x4xf32, #tpu.memory_space<vmem>>, %arg7: memref<1x4xf32, #tpu.memory_space<vmem>>, %arg8: memref<256x4xf32, #tpu.memory_space<vmem>>) attributes {dimension_semantics = [#tpu.dimension_semantics<parallel>], iteration_bounds = array<i64: 1>, scalar_prefetch = 0 : i64, scratch_operands = 0 : i64, tpu.core_type = #tpu.core_type<tc>, window_params = [{transform_indices = @transform_0, window_bounds = array<i64: 256, 9>}, {pipeline_mode = #tpu.pipeline_mode<synchronous>, transform_indices = @transform_1, window_bounds = array<i64: 9, 128>}, {pipeline_mode = #tpu.pipeline_mode<synchronous>, transform_indices = @transform_2, window_bounds = array<i64: 1, 128>}, {pipeline_mode = #tpu.pipeline_mode<synchronous>, transform_indices = @transform_3, window_bounds = array<i64: 128, 64>}, {pipeline_mode = #tpu.pipeline_mode<synchronous>, transform_indices = @transform_4, window_bounds = array<i64: 1, 64>}, {pipeline_mode = #tpu.pipeline_mode<synchronous>, transform_indices = @transform_5, window_bounds = array<i64: 64, 4>}, {pipeline_mode = #tpu.pipeline_mode<synchronous>, transform_indices = @transform_6, window_bounds = array<i64: 1, 4>}, {transform_indices = @transform_7, window_bounds = array<i64: 256, 4>}]} {
    %c0 = arith.constant 0 : index
    %c0_0 = arith.constant 0 : index
    %0 = vector.load %arg1[%c0, %c0_0] : memref<256x9xf32, #tpu.memory_space<vmem>>, vector<256x9xf32>
    %c0_1 = arith.constant 0 : index
    %c0_2 = arith.constant 0 : index
    %1 = vector.load %arg2[%c0_1, %c0_2] : memref<9x128xf32, #tpu.memory_space<vmem>>, vector<9x128xf32>
    %cst = arith.constant dense<0.000000e+00> : vector<256x128xf32>
    %2 = tpu.matmul %0, %1, %cst {dimension_numbers = #tpu.dot_dimension_numbers<[1], [0], [0], [1], [0, 0, 1, 1], [], []>} : vector<256x9xf32>, vector<9x128xf32>, vector<256x128xf32> -> vector<256x128xf32>
    %c0_3 = arith.constant 0 : index
    %c0_4 = arith.constant 0 : index
    %3 = vector.load %arg3[%c0_3, %c0_4] : memref<1x128xf32, #tpu.memory_space<vmem>>, vector<1x128xf32>
    %4 = vector.broadcast %3 : vector<1x128xf32> to vector<256x128xf32>
    %5 = arith.addf %2, %4 : vector<256x128xf32>
    %cst_5 = arith.constant 0.000000e+00 : f32
    %6 = vector.broadcast %cst_5 : f32 to vector<256x128xf32>
    %7 = arith.maximumf %5, %6 : vector<256x128xf32>
    %c0_6 = arith.constant 0 : index
    %c0_7 = arith.constant 0 : index
    %8 = vector.load %arg4[%c0_6, %c0_7] : memref<128x64xf32, #tpu.memory_space<vmem>>, vector<128x64xf32>
    %cst_8 = arith.constant dense<0.000000e+00> : vector<256x64xf32>
    %9 = tpu.matmul %7, %8, %cst_8 {dimension_numbers = #tpu.dot_dimension_numbers<[1], [0], [0], [1], [0, 0, 1, 1], [], []>} : vector<256x128xf32>, vector<128x64xf32>, vector<256x64xf32> -> vector<256x64xf32>
    %c0_9 = arith.constant 0 : index
    %c0_10 = arith.constant 0 : index
    %10 = vector.load %arg5[%c0_9, %c0_10] : memref<1x64xf32, #tpu.memory_space<vmem>>, vector<1x64xf32>
    %11 = vector.broadcast %10 : vector<1x64xf32> to vector<256x64xf32>
    %12 = arith.addf %9, %11 : vector<256x64xf32>
    %cst_11 = arith.constant 0.000000e+00 : f32
    %13 = vector.broadcast %cst_11 : f32 to vector<256x64xf32>
    %14 = arith.maximumf %12, %13 : vector<256x64xf32>
    %c0_12 = arith.constant 0 : index
    %c0_13 = arith.constant 0 : index
    %15 = vector.load %arg6[%c0_12, %c0_13] : memref<64x4xf32, #tpu.memory_space<vmem>>, vector<64x4xf32>
    %cst_14 = arith.constant dense<0.000000e+00> : vector<256x4xf32>
    %16 = tpu.matmul %14, %15, %cst_14 {dimension_numbers = #tpu.dot_dimension_numbers<[1], [0], [0], [1], [0, 0, 1, 1], [], []>} : vector<256x64xf32>, vector<64x4xf32>, vector<256x4xf32> -> vector<256x4xf32>
    %c0_15 = arith.constant 0 : index
    %c0_16 = arith.constant 0 : index
    %17 = vector.load %arg7[%c0_15, %c0_16] : memref<1x4xf32, #tpu.memory_space<vmem>>, vector<1x4xf32>
    %18 = vector.broadcast %17 : vector<1x4xf32> to vector<256x4xf32>
    %19 = arith.addf %16, %18 : vector<256x4xf32>
    %c0_17 = arith.constant 0 : index
    %c0_18 = arith.constant 0 : index
    %20 = vector.load %arg8[%c0_17, %c0_18] : memref<256x4xf32, #tpu.memory_space<vmem>>, vector<256x4xf32>
    tpu.vector_store %arg8[%c0_17, %c0_18], %19 {strides = array<i32>} : memref<256x4xf32, #tpu.memory_space<vmem>>, vector<256x4xf32>,
    return
  }
  func.func @transform_0(%arg0: i32) -> (i32, i32) {
    %c0_i32 = arith.constant 0 : i32
    %c0_i32_0 = arith.constant 0 : i32
    return %arg0, %c0_i32 : i32, i32
  }
  func.func @transform_1(%arg0: i32) -> (i32, i32) {
    %c0_i32 = arith.constant 0 : i32
    %c0_i32_0 = arith.constant 0 : i32
    %c0_i32_1 = arith.constant 0 : i32
    return %c0_i32, %c0_i32_0 : i32, i32
  }
  func.func @transform_2(%arg0: i32) -> (i32, i32) {
    %c0_i32 = arith.constant 0 : i32
    %c0_i32_0 = arith.constant 0 : i32
    %c0_i32_1 = arith.constant 0 : i32
    return %c0_i32, %c0_i32_0 : i32, i32
  }
  func.func @transform_3(%arg0: i32) -> (i32, i32) {
    %c0_i32 = arith.constant 0 : i32
    %c0_i32_0 = arith.constant 0 : i32
    %c0_i32_1 = arith.constant 0 : i32
    return %c0_i32, %c0_i32_0 : i32, i32
  }
  func.func @transform_4(%arg0: i32) -> (i32, i32) {
    %c0_i32 = arith.constant 0 : i32
    %c0_i32_0 = arith.constant 0 : i32
    %c0_i32_1 = arith.constant 0 : i32
    return %c0_i32, %c0_i32_0 : i32, i32
  }
  func.func @transform_5(%arg0: i32) -> (i32, i32) {
    %c0_i32 = arith.constant 0 : i32
    %c0_i32_0 = arith.constant 0 : i32
    %c0_i32_1 = arith.constant 0 : i32
    return %c0_i32, %c0_i32_0 : i32, i32
  }
  func.func @transform_6(%arg0: i32) -> (i32, i32) {
    %c0_i32 = arith.constant 0 : i32
    %c0_i32_0 = arith.constant 0 : i32
    %c0_i32_1 = arith.constant 0 : i32
    return %c0_i32, %c0_i32_0 : i32, i32
  }
  func.func @transform_7(%arg0: i32) -> (i32, i32) {
    %c0_i32 = arith.constant 0 : i32
    %c0_i32_0 = arith.constant 0 : i32
    return %arg0, %c0_i32 : i32, i32
  }
}

</mosaic_0001>

<bundles_post_ra>
// kernel: tpu_custom_call.1
= control target key start
LH: loop header
LB: loop body
LE: loop exit
PB: predicated region body
PF: predicated region fallthrough
CT: control target
= control target key end

     0   :  { %vm164_vm0 = vcmask 1040384   ;;  %vm67_vm1 = vcmask 72704   ;;  %vm1522_vm2 = vmmov 1   ;;  %vm720_vm4 = vcmask 523264   ;;  %s2061_s1 = inlined_call_operand.vmem [shape: f32[9,128], index: 1, kind: input, shape index: {}]   ;;  %s2062_s0 = inlined_call_operand.vmem [shape: f32[256,9], index: 0, kind: input, shape index: {}]   ;;  %s2063_s3 = inlined_call_operand.vmem [shape: f32[128,64], index: 3, kind: input, shape index: {}]   ;;  %s2064_s5 = inlined_call_operand.vmem [shape: f32[64,4], index: 5, kind: input, shape index: {}]   ;;  %s2065_s2 = inlined_call_operand.vmem [shape: f32[1,128], index: 2, kind: input, shape index: {}]   ;;  %s2066_s4 = inlined_call_operand.vmem [shape: f32[1,64], index: 4, kind: input, shape index: {}]   ;;  %s2067_s6 = inlined_call_operand.vmem [shape: f32[1,4], index: 6, kind: input, shape index: {}]   ;;  %s2068_s7 = inlined_call_operand.vmem [shape: f32[256,4], index: 7, kind: output, shape index: {}]  }
   0x1   :  { %v58_v0 = vld [vmem:[%s2061_s1] sm:$0xff]  ;;  %v59_v1 = vld [vmem:[%s2061_s1 + $0x8] sm:$0x1]  ;;  %vm1466_vm3 = vmpackc.low %vm164_vm0, %vm1522_vm2  ;;  %vm1042_vm5 = vcmask 31744  }
   0x2   :  { %v1465_v2 = vpack.c.bf16 %v59_v1, %v58_v0  ;;  %v26_v3 = vld [vmem:[%s2062_s0] sm:$0xff]  ;;  %v27_v4 = vld [vmem:[%s2062_s0 + $0x8] sm:$0xff]  ;;  %v28_v5 = vld [vmem:[%s2062_s0 + $0x10] sm:$0xff] }
   0x3   :  { %1273 = vmatprep.mubr.msk.f32.mxu0 %vm67_vm1, %v26_v3  ;;  %v42_v6 = vld [vmem:[%s2062_s0 + $0x80] sm:$0xff]  ;;  %v43_v7 = vld [vmem:[%s2062_s0 + $0x88] sm:$0xff]  ;;  %v44_v8 = vld [vmem:[%s2062_s0 + $0x90] sm:$0xff] }
   0x4   :  { %1467 = vmatprep.subr.msk.bf16.mxu0 %vm1466_vm3, %v1465_v2  ;;  %1519 = vmatprep.subr.msk.bf16.mxu1 %vm1466_vm3, %v1465_v2  ;;  %v29_v9 = vld [vmem:[%s2062_s0 + $0x18] sm:$0xff]  ;;  %v30_v10 = vld [vmem:[%s2062_s0 + $0x20] sm:$0xff]  ;;  %v31_v13 = vld [vmem:[%s2062_s0 + $0x28] sm:$0xff] }
   0x5   :  { %1470 = vmatpush3.bf16.msk.msra.mxu0 %vm1466_vm3, %v1465_v2  ;;  %1520 = vmatpush3.bf16.msk.msra.mxu1 %vm1466_vm3, %v1465_v2  ;;  %v45_v11 = vld [vmem:[%s2062_s0 + $0x98] sm:$0xff]  ;;  %v46_v12 = vld [vmem:[%s2062_s0 + $0xa0] sm:$0xff]  ;;  %v426_v15 = vld [vmem:[%s2063_s3 + $0x8] sm:$0xff] }
   0x6   :  { %1297 = vmatprep.mubr.msk.f32.mxu1 %vm67_vm1, %v42_v6  ;;  %v425_v14 = vld [vmem:[%s2063_s3] sm:$0xff]  ;;  %v427_v16 = vld [vmem:[%s2063_s3 + $0x10] sm:$0xff]  ;;  %v428_v17 = vld [vmem:[%s2063_s3 + $0x18] sm:$0xff] }
   0x7   :  { %v32_v18 = vld [vmem:[%s2062_s0 + $0x30] sm:$0xff]  ;;  %v47_v19 = vld [vmem:[%s2062_s0 + $0xa8] sm:$0xff]  ;;  %v1471_v20 = vpack.c.bf16 %v426_v15, %v425_v14  ;;  %v1475_v22 = vpack.c.bf16 %v428_v17, %v427_v16  ;;  %v429_v23 = vld [vmem:[%s2063_s3 + $0x20] sm:$0xff] }
   0x8   :  { %1274 = vmatmul.mubr.msk.f32.vlgmr.msra.gmra.mrb[0].mxu0 %vm67_vm1, %v27_v4  ;;  %1298 = vmatmul.mubr.msk.f32.vlgmr.msra.gmra.mrb[0].mxu1 %vm67_vm1, %v43_v7  ;;  %v48_v21 = vld [vmem:[%s2062_s0 + $0xb0] sm:$0xff]  ;;  %v430_v24 = vld [vmem:[%s2063_s3 + $0x28] sm:$0xff]  ;;  %v33_v25 = vld [vmem:[%s2062_s0 + $0x38] sm:$0xff] }
   0x9   :  { %1276 = vmatprep.mubr.msk.f32.mxu0 %vm67_vm1, %v28_v5  ;;  %1300 = vmatprep.mubr.msk.f32.mxu1 %vm67_vm1, %v44_v8  ;;  %v34_v26 = vld [vmem:[%s2062_s0 + $0x40] sm:$0xff]  ;;  %v49_v27 = vld [vmem:[%s2062_s0 + $0xb8] sm:$0xff]  ;;  %v1479_v29 = vpack.c.bf16 %v430_v24, %v429_v23  ;;  %v431_v30 = vld [vmem:[%s2063_s3 + $0x30] sm:$0xff] }
   0xa   :  { %1472 = vmatprep.subr.bf16.mxu1 %v1471_v20  ;;  %v50_v28 = vld [vmem:[%s2062_s0 + $0xc0] sm:$0xff]  ;;  %v432_v31 = vld [vmem:[%s2063_s3 + $0x38] sm:$0xff]  ;;  %v35_v32 = vld [vmem:[%s2062_s0 + $0x48] sm:$0xff] }
   0xb   :  { %1474 = vmatpush3.bf16.msra.mxu1 %v1471_v20  ;;  %v36_v33 = vld [vmem:[%s2062_s0 + $0x50] sm:$0xff]  ;;  %v51_v34 = vld [vmem:[%s2062_s0 + $0xc8] sm:$0xff]  ;;  %v1483_v36 = vpack.c.bf16 %v432_v31, %v431_v30  ;;  %v433_v37 = vld [vmem:[%s2063_s3 + $0x40] sm:$0xff] }
   0xc   :  { %1277 = vmatmul.mubr.msk.f32.gmra.mrb[2].mxu0 %vm67_vm1, %v29_v9  ;;  %1301 = vmatmul.mubr.msk.f32.gmra.mrb[2].mxu1 %vm67_vm1, %v45_v11  ;;  %v52_v35 = vld [vmem:[%s2062_s0 + $0xd0] sm:$0xff]  ;;  %v434_v38 = vld [vmem:[%s2063_s3 + $0x48] sm:$0xff]  ;;  %v37_v39 = vld [vmem:[%s2062_s0 + $0x58] sm:$0xff] }
   0xd   :  { %1279 = vmatprep.mubr.msk.f32.mxu0 %vm67_vm1, %v30_v10  ;;  %1303 = vmatprep.mubr.msk.f32.mxu1 %vm67_vm1, %v46_v12  ;;  %v38_v40 = vld [vmem:[%s2062_s0 + $0x60] sm:$0xff]  ;;  %v53_v41 = vld [vmem:[%s2062_s0 + $0xd8] sm:$0xff]  ;;  %v1487_v43 = vpack.c.bf16 %v434_v38, %v433_v37  ;;  %v435_v44 = vld [vmem:[%s2063_s3 + $0x50] sm:$0xff] }
   0xe   :  { %1476 = vmatprep.subr.bf16.mxu1 %v1475_v22  ;;  %v54_v42 = vld [vmem:[%s2062_s0 + $0xe0] sm:$0xff]  ;;  %v436_v45 = vld [vmem:[%s2063_s3 + $0x58] sm:$0xff]  ;;  %v39_v46 = vld [vmem:[%s2062_s0 + $0x68] sm:$0xff] }
   0xf   :  { %1478 = vmatpush3.bf16.msra.mxu1 %v1475_v22  ;;  %v40_v47 = vld [vmem:[%s2062_s0 + $0x70] sm:$0xff]  ;;  %v55_v48 = vld [vmem:[%s2062_s0 + $0xe8] sm:$0xff]  ;;  %v1491_v50 = vpack.c.bf16 %v436_v45, %v435_v44  ;;  %v437_v51 = vld [vmem:[%s2063_s3 + $0x60] sm:$0xff] }
  0x10   :  { %1280 = vmatmul.mubr.msk.f32.gmra.mrb[4].mxu0 %vm67_vm1, %v31_v13  ;;  %1304 = vmatmul.mubr.msk.f32.gmra.mrb[4].mxu1 %vm67_vm1, %v47_v19  ;;  %v56_v49 = vld [vmem:[%s2062_s0 + $0xf0] sm:$0xff]  ;;  %v438_v52 = vld [vmem:[%s2063_s3 + $0x68] sm:$0xff]  ;;  %v41_v53 = vld [vmem:[%s2062_s0 + $0x78] sm:$0xff] }
  0x11   :  { %1282 = vmatprep.mubr.msk.f32.mxu0 %vm67_vm1, %v32_v18  ;;  %1306 = vmatprep.mubr.msk.f32.mxu1 %vm67_vm1, %v48_v21  ;;  %v57_v54 = vld [vmem:[%s2062_s0 + $0xf8] sm:$0xff]  ;;  %v1495_v55 = vpack.c.bf16 %v438_v52, %v437_v51  ;;  %v439_v56 = vld [vmem:[%s2063_s3 + $0x70] sm:$0xff]  ;;  %v705_v59 = vld [vmem:[%s2064_s5] sm:$0xff] }
  0x12   :  { %1480 = vmatprep.subr.bf16.mxu1 %v1479_v29  ;;  %v440_v57 = vld [vmem:[%s2063_s3 + $0x78] sm:$0xff]  ;;  %v706_v60 = vld [vmem:[%s2064_s5 + $0x8] sm:$0xff]  ;;  %v707_v61 = vld [vmem:[%s2064_s5 + $0x10] sm:$0xff] }
  0x13   :  { %1482 = vmatpush3.bf16.msra.mxu1 %v1479_v29  ;;  %v1499_v58 = vpack.c.bf16 %v440_v57, %v439_v56  ;;  %v1503_v62 = vpack.c.bf16 %v706_v60, %v705_v59  ;;  %v708_v63 = vld [vmem:[%s2064_s5 + $0x18] sm:$0xff]  ;;  %v709_v1 = vld [vmem:[%s2064_s5 + $0x20] sm:$0xff]  ;;  %v710_v2 = vld [vmem:[%s2064_s5 + $0x28] sm:$0xff] }
  0x14   :  { %1283 = vmatmul.mubr.msk.f32.gmra.mrb[6].mxu0 %vm67_vm1, %v33_v25  ;;  %1307 = vmatmul.mubr.msk.f32.gmra.mrb[6].mxu1 %vm67_vm1, %v49_v27  ;;  %v1507_v0 = vpack.c.bf16 %v708_v63, %v707_v61  ;;  %v1511_v3 = vpack.c.bf16 %v710_v2, %v709_v1  ;;  %v711_v4 = vld [vmem:[%s2064_s5 + $0x30] sm:$0xff]  ;;  %v712_v5 = vld [vmem:[%s2064_s5 + $0x38] sm:$0xff]  ;;  %v1772_v7 = vld [vmem:[%s2065_s2] ss:$0 sm:$0xff] }
  0x15   :  { %1285 = vmatprep.mubr.msk.f32.mxu0 %vm67_vm1, %v34_v26  ;;  %1309 = vmatprep.mubr.msk.f32.mxu1 %vm67_vm1, %v50_v28  ;;  %v1515_v6 = vpack.c.bf16 %v712_v5, %v711_v4 }
  0x16   :  { %1484 = vmatprep.subr.bf16.mxu1 %v1483_v36  ;;  %1504 = vmatprep.subr.bf16.mxu0 %v1503_v62 }
  0x17   :  { %1486 = vmatpush3.bf16.msra.mxu1 %v1483_v36  ;;  %1506 = vmatpush3.bf16.msra.mxu0 %v1503_v62 }
  0x18   :  { %1286 = vmatmul.mubr.msk.f32.gmra.mrb[8].mxu0 %vm67_vm1, %v35_v32  ;;  %1310 = vmatmul.mubr.msk.f32.gmra.mrb[8].mxu1 %vm67_vm1, %v51_v34 }
  0x19   :  { %1288 = vmatprep.mubr.msk.f32.mxu0 %vm67_vm1, %v36_v33  ;;  %1312 = vmatprep.mubr.msk.f32.mxu1 %vm67_vm1, %v52_v35 }
  0x1a   :  { %1488 = vmatprep.subr.bf16.mxu1 %v1487_v43  ;;  %1508 = vmatprep.subr.bf16.mxu0 %v1507_v0 }
  0x1b   :  { %1490 = vmatpush3.bf16.msra.mxu1 %v1487_v43  ;;  %1510 = vmatpush3.bf16.msra.mxu0 %v1507_v0 }
  0x1c   :  { %1289 = vmatmul.mubr.msk.f32.gmra.mrb[10].mxu0 %vm67_vm1, %v37_v39  ;;  %1313 = vmatmul.mubr.msk.f32.gmra.mrb[10].mxu1 %vm67_vm1, %v53_v41 }
  0x1d   :  { %1291 = vmatprep.mubr.msk.f32.mxu0 %vm67_vm1, %v38_v40  ;;  %1315 = vmatprep.mubr.msk.f32.mxu1 %vm67_vm1, %v54_v42 }
  0x1e   :  { %1492 = vmatprep.subr.bf16.mxu1 %v1491_v50  ;;  %1512 = vmatprep.subr.bf16.mxu0 %v1511_v3 }
  0x1f   :  { %1494 = vmatpush3.bf16.msra.mxu1 %v1491_v50  ;;  %1514 = vmatpush3.bf16.msra.mxu0 %v1511_v3 }
  0x20   :  { %1292 = vmatmul.mubr.msk.f32.gmra.mrb[12].mxu0 %vm67_vm1, %v39_v46  ;;  %1316 = vmatmul.mubr.msk.f32.gmra.mrb[12].mxu1 %vm67_vm1, %v55_v48 }
  0x21   :  { %1294 = vmatprep.mubr.msk.f32.mxu0 %vm67_vm1, %v40_v47  ;;  %1318 = vmatprep.mubr.msk.f32.mxu1 %vm67_vm1, %v56_v49 }
  0x22   :  { %1496 = vmatprep.subr.bf16.mxu1 %v1495_v55  ;;  %1516 = vmatprep.subr.bf16.mxu0 %v1515_v6 }
  0x23   :  { %1498 = vmatpush3.bf16.msra.mxu1 %v1495_v55  ;;  %1518 = vmatpush3.bf16.msra.mxu0 %v1515_v6 }
  0x24   :  { %1295 = vmatmul.mubr.msk.f32.gmra.mrb[14].mxu0 %vm67_vm1, %v41_v53  ;;  %1319 = vmatmul.mubr.msk.f32.gmra.mrb[14].mxu1 %vm67_vm1, %v57_v54 }
  0x25   :  { %1500 = vmatprep.subr.bf16.mxu1 %v1499_v58 }
  0x27   :  { %1502 = vmatpush3.bf16.msra.mxu1 %v1499_v58 }
  0xdb   :  { %v1275_v8 = vpop.f32.mrb[0].mxu0  ;;  %v1775_v11 = vpop.f32.mrb[0].mxu1 }
  0xdc   :  { %v240_v9 = vadd.f32 %v1275_v8, %v1772_v7  ;;  %v234_v10 = vpop.f32.mrb[1].mxu0  ;;  %v1778_v13 = vpop.f32.mrb[1].mxu1 }
  0xdd   :  { %v235_v12 = vadd.f32 %v1772_v7, %v234_v10  ;;  %v315_v0 = vadd.f32 %v1772_v7, %v1778_v13 }
  0xde   :  { %v394_v16 = vmax.f32 %v240_v9, 0.0 }
  0xdf   :  { %v393_v14 = vmax.f32 %v235_v12, 0.0  ;;  %v1278_v15 = vpop.f32.mrb[2].mxu0  ;;  %v1781_v19 = vpop.f32.mrb[2].mxu1  ;;  %v409_v9 = vmax.f32 %v315_v0, 0.0 }
  0xe0   :  { %v250_v17 = vadd.f32 %v1278_v15, %v1772_v7  ;;  %v244_v18 = vpop.f32.mrb[3].mxu0  ;;  %v1784_v21 = vpop.f32.mrb[3].mxu1 }
  0xe1   :  { %v245_v20 = vadd.f32 %v1772_v7, %v244_v18  ;;  %1353 = vmatprep.mubr.f32.mxu1 %v393_v14  ;;  %v325_v10 = vadd.f32 %v1772_v7, %v1784_v21  ;;  %v320_v14 = vadd.f32 %v1775_v11, %v1772_v7 }
  0xe2   :  { %1354 = vmatmul.mubr.f32.vlgmr.msra.gmra.mrb[16].mxu1 %v394_v16  ;;  %v396_v24 = vmax.f32 %v250_v17, 0.0  ;;  %v330_v17 = vadd.f32 %v1781_v19, %v1772_v7 }
  0xe3   :  { %v395_v22 = vmax.f32 %v245_v20, 0.0  ;;  %v1281_v23 = vpop.f32.mrb[4].mxu0  ;;  %v1787_v27 = vpop.f32.mrb[4].mxu1  ;;  %v411_v13 = vmax.f32 %v325_v10, 0.0  ;;  %v410_v16 = vmax.f32 %v320_v14, 0.0 }
  0xe4   :  { %v260_v25 = vadd.f32 %v1281_v23, %v1772_v7  ;;  %v254_v26 = vpop.f32.mrb[5].mxu0  ;;  %v334_v29 = vpop.f32.mrb[5].mxu1  ;;  %v412_v21 = vmax.f32 %v330_v17, 0.0 }
  0xe5   :  { %v255_v28 = vadd.f32 %v1772_v7, %v254_v26  ;;  %1356 = vmatprep.mubr.f32.mxu1 %v395_v22  ;;  %v335_v15 = vadd.f32 %v1772_v7, %v334_v29  ;;  %v340_v22 = vadd.f32 %v1787_v27, %v1772_v7 }
  0xe6   :  { %1357 = vmatmul.mubr.f32.gmra.mrb[18].mxu1 %v396_v24  ;;  %v398_v32 = vmax.f32 %v260_v25, 0.0 }
  0xe7   :  { %v397_v30 = vmax.f32 %v255_v28, 0.0  ;;  %v1284_v31 = vpop.f32.mrb[6].mxu0  ;;  %v1791_v35 = vpop.f32.mrb[6].mxu1  ;;  %v413_v18 = vmax.f32 %v335_v15, 0.0  ;;  %v414_v24 = vmax.f32 %v340_v22, 0.0 }
  0xe8   :  { %v270_v33 = vadd.f32 %v1284_v31, %v1772_v7  ;;  %v264_v34 = vpop.f32.mrb[7].mxu0  ;;  %v344_v37 = vpop.f32.mrb[7].mxu1  ;;  %v350_v25 = vadd.f32 %v1791_v35, %v1772_v7 }
  0xe9   :  { %v265_v36 = vadd.f32 %v1772_v7, %v264_v34  ;;  %1359 = vmatprep.mubr.f32.mxu1 %v397_v30  ;;  %v345_v20 = vadd.f32 %v1772_v7, %v344_v37 }
  0xea   :  { %1360 = vmatmul.mubr.f32.gmra.mrb[20].mxu1 %v398_v32  ;;  %v400_v40 = vmax.f32 %v270_v33, 0.0  ;;  %v416_v28 = vmax.f32 %v350_v25, 0.0 }
  0xeb   :  { %v399_v38 = vmax.f32 %v265_v36, 0.0  ;;  %v1287_v39 = vpop.f32.mrb[8].mxu0  ;;  %v1795_v43 = vpop.f32.mrb[8].mxu1  ;;  %v415_v11 = vmax.f32 %v345_v20, 0.0 }
  0xec   :  { %v280_v41 = vadd.f32 %v1287_v39, %v1772_v7  ;;  %v274_v42 = vpop.f32.mrb[9].mxu0  ;;  %v354_v45 = vpop.f32.mrb[9].mxu1  ;;  %v360_v29 = vadd.f32 %v1795_v43, %v1772_v7 }
  0xed   :  { %v275_v44 = vadd.f32 %v1772_v7, %v274_v42  ;;  %1362 = vmatprep.mubr.f32.mxu1 %v399_v38  ;;  %v355_v23 = vadd.f32 %v1772_v7, %v354_v45 }
  0xee   :  { %1363 = vmatmul.mubr.f32.gmra.mrb[22].mxu1 %v400_v40  ;;  %v402_v48 = vmax.f32 %v280_v41, 0.0  ;;  %v418_v31 = vmax.f32 %v360_v29, 0.0  ;;  %v1830_v41 = vld [vmem:[%s2066_s4] ss:$0 sm:$0xff] }
  0xef   :  { %v401_v46 = vmax.f32 %v275_v44, 0.0  ;;  %v1290_v47 = vpop.f32.mrb[10].mxu0  ;;  %v1314_v51 = vpop.f32.mrb[10].mxu1  ;;  %v417_v19 = vmax.f32 %v355_v23, 0.0 }
  0xf0   :  { %v290_v49 = vadd.f32 %v1290_v47, %v1772_v7  ;;  %v284_v50 = vpop.f32.mrb[11].mxu0  ;;  %v364_v53 = vpop.f32.mrb[11].mxu1  ;;  %v370_v32 = vadd.f32 %v1314_v51, %v1772_v7 }
  0xf1   :  { %v285_v52 = vadd.f32 %v1772_v7, %v284_v50  ;;  %1365 = vmatprep.mubr.f32.mxu1 %v401_v46  ;;  %v365_v26 = vadd.f32 %v1772_v7, %v364_v53 }
  0xf2   :  { %1366 = vmatmul.mubr.f32.gmra.mrb[24].mxu1 %v402_v48  ;;  %v404_v56 = vmax.f32 %v290_v49, 0.0  ;;  %v420_v35 = vmax.f32 %v370_v32, 0.0 }
  0xf3   :  { %v403_v54 = vmax.f32 %v285_v52, 0.0  ;;  %v1293_v55 = vpop.f32.mrb[12].mxu0  ;;  %v1317_v59 = vpop.f32.mrb[12].mxu1  ;;  %v419_v27 = vmax.f32 %v365_v26, 0.0 }
  0xf4   :  { %v300_v57 = vadd.f32 %v1293_v55, %v1772_v7  ;;  %v294_v58 = vpop.f32.mrb[13].mxu0  ;;  %v374_v61 = vpop.f32.mrb[13].mxu1  ;;  %v380_v36 = vadd.f32 %v1317_v59, %v1772_v7 }
  0xf5   :  { %v295_v60 = vadd.f32 %v1772_v7, %v294_v58  ;;  %1368 = vmatprep.mubr.f32.mxu1 %v403_v54  ;;  %v375_v30 = vadd.f32 %v1772_v7, %v374_v61 }
  0xf6   :  { %1369 = vmatmul.mubr.f32.gmra.mrb[26].mxu1 %v404_v56  ;;  %v406_v1 = vmax.f32 %v300_v57, 0.0  ;;  %v422_v38 = vmax.f32 %v380_v36, 0.0 }
  0xf7   :  { %v405_v62 = vmax.f32 %v295_v60, 0.0  ;;  %v1296_v63 = vpop.f32.mrb[14].mxu0  ;;  %v1320_v4 = vpop.f32.mrb[14].mxu1  ;;  %v421_v33 = vmax.f32 %v375_v30, 0.0 }
  0xf8   :  { %v310_v2 = vadd.f32 %v1296_v63, %v1772_v7  ;;  %v304_v3 = vpop.f32.mrb[15].mxu0  ;;  %v384_v6 = vpop.f32.mrb[15].mxu1  ;;  %v390_v39 = vadd.f32 %v1320_v4, %v1772_v7 }
  0xf9   :  { %v305_v5 = vadd.f32 %v1772_v7, %v304_v3  ;;  %1371 = vmatprep.mubr.f32.mxu1 %v405_v62  ;;  %v385_v34 = vadd.f32 %v1772_v7, %v384_v6 }
  0xfa   :  { %1372 = vmatmul.mubr.f32.gmra.mrb[28].mxu1 %v406_v1  ;;  %v408_v12 = vmax.f32 %v310_v2, 0.0  ;;  %v424_v40 = vmax.f32 %v390_v39, 0.0 }
  0xfb   :  { %v407_v8 = vmax.f32 %v305_v5, 0.0  ;;  %v423_v37 = vmax.f32 %v385_v34, 0.0 }
  0xfd   :  { %1374 = vmatprep.mubr.f32.mxu1 %v407_v8 }
  0xfe   :  { %1375 = vmatmul.mubr.f32.gmra.mrb[30].mxu1 %v408_v12 }
  0xff   :  { %1377 = vmatprep.mubr.f32.mxu1 %v409_v9 }
 0x102   :  { %1378 = vmatmul.mubr.f32.gmra.mrb[32].mxu1 %v410_v16 }
 0x103   :  { %1380 = vmatprep.mubr.f32.mxu1 %v411_v13 }
 0x106   :  { %1381 = vmatmul.mubr.f32.gmra.mrb[34].mxu1 %v412_v21 }
 0x107   :  { %1383 = vmatprep.mubr.f32.mxu1 %v413_v18 }
 0x10a   :  { %1384 = vmatmul.mubr.f32.gmra.mrb[36].mxu1 %v414_v24 }
 0x10b   :  { %1386 = vmatprep.mubr.f32.mxu1 %v415_v11 }
 0x10e   :  { %1387 = vmatmul.mubr.f32.gmra.mrb[38].mxu1 %v416_v28 }
 0x10f   :  { %1389 = vmatprep.mubr.f32.mxu1 %v417_v19 }
 0x112   :  { %1390 = vmatmul.mubr.f32.gmra.mrb[40].mxu1 %v418_v31 }
 0x113   :  { %1392 = vmatprep.mubr.f32.mxu1 %v419_v27 }
 0x116   :  { %1393 = vmatmul.mubr.f32.gmra.mrb[42].mxu1 %v420_v35 }
 0x117   :  { %1395 = vmatprep.mubr.f32.mxu1 %v421_v33 }
 0x11a   :  { %1396 = vmatmul.mubr.f32.gmra.mrb[44].mxu1 %v422_v38 }
 0x11b   :  { %1398 = vmatprep.mubr.f32.mxu1 %v423_v37 }
 0x11e   :  { %1399 = vmatmul.mubr.f32.gmra.mrb[46].mxu1 %v424_v40 }
 0x1b5   :  { %v1355_v42 = vpop.f32.mrb[16].mxu1 }
 0x1b6   :  { %v520_v43 = vadd.f32 %v1355_v42, %v1830_v41  ;;  %v514_v44 = vpop.f32.mrb[17].mxu1 }
 0x1b7   :  { %v515_v45 = vadd.f32 %v1830_v41, %v514_v44 }
 0x1b8   :  { %v674_v48 = vmax.f32 %v520_v43, 0.0 }
 0x1b9   :  { %v673_v46 = vmax.f32 %v515_v45, 0.0  ;;  %v1358_v47 = vpop.f32.mrb[18].mxu1 }
 0x1ba   :  { %v530_v7 = vadd.f32 %v1358_v47, %v1830_v41  ;;  %v524_v49 = vpop.f32.mrb[19].mxu1 }
 0x1bb   :  { %v525_v50 = vadd.f32 %v1830_v41, %v524_v49  ;;  %1417 = vmatprep.mubr.msk.f32.mxu0 %vm720_vm4, %v673_v46 }
 0x1bc   :  { %1418 = vmatmul.mubr.msk.f32.vlgmr.msra.gmra.mrb[16].mxu0 %vm720_vm4, %v674_v48  ;;  %v676_v53 = vmax.f32 %v530_v7, 0.0 }
 0x1bd   :  { %v675_v51 = vmax.f32 %v525_v50, 0.0  ;;  %v1361_v52 = vpop.f32.mrb[20].mxu1 }
 0x1be   :  { %v540_v54 = vadd.f32 %v1361_v52, %v1830_v41  ;;  %v534_v55 = vpop.f32.mrb[21].mxu1 }
 0x1bf   :  { %v535_v56 = vadd.f32 %v1830_v41, %v534_v55  ;;  %1420 = vmatprep.mubr.msk.f32.mxu0 %vm720_vm4, %v675_v51 }
 0x1c0   :  { %1421 = vmatmul.mubr.msk.f32.gmra.mrb[18].mxu0 %vm720_vm4, %v676_v53  ;;  %v678_v59 = vmax.f32 %v540_v54, 0.0 }
 0x1c1   :  { %v677_v57 = vmax.f32 %v535_v56, 0.0  ;;  %v1364_v58 = vpop.f32.mrb[22].mxu1 }
 0x1c2   :  { %v550_v60 = vadd.f32 %v1364_v58, %v1830_v41  ;;  %v544_v61 = vpop.f32.mrb[23].mxu1 }
 0x1c3   :  { %v545_v62 = vadd.f32 %v1830_v41, %v544_v61  ;;  %1423 = vmatprep.mubr.msk.f32.mxu0 %vm720_vm4, %v677_v57 }
 0x1c4   :  { %1424 = vmatmul.mubr.msk.f32.gmra.mrb[20].mxu0 %vm720_vm4, %v678_v59  ;;  %v680_v1 = vmax.f32 %v550_v60, 0.0 }
 0x1c5   :  { %v679_v63 = vmax.f32 %v545_v62, 0.0  ;;  %v1367_v0 = vpop.f32.mrb[24].mxu1 }
 0x1c6   :  { %v560_v2 = vadd.f32 %v1367_v0, %v1830_v41  ;;  %v554_v3 = vpop.f32.mrb[25].mxu1 }
 0x1c7   :  { %v555_v4 = vadd.f32 %v1830_v41, %v554_v3  ;;  %1426 = vmatprep.mubr.msk.f32.mxu0 %vm720_vm4, %v679_v63 }
 0x1c8   :  { %1427 = vmatmul.mubr.msk.f32.gmra.mrb[22].mxu0 %vm720_vm4, %v680_v1  ;;  %v682_v8 = vmax.f32 %v560_v2, 0.0 }
 0x1c9   :  { %v681_v5 = vmax.f32 %v555_v4, 0.0  ;;  %v1370_v6 = vpop.f32.mrb[26].mxu1 }
 0x1ca   :  { %v570_v9 = vadd.f32 %v1370_v6, %v1830_v41  ;;  %v564_v10 = vpop.f32.mrb[27].mxu1 }
 0x1cb   :  { %v565_v12 = vadd.f32 %v1830_v41, %v564_v10  ;;  %1429 = vmatprep.mubr.msk.f32.mxu0 %vm720_vm4, %v681_v5 }
 0x1cc   :  { %1430 = vmatmul.mubr.msk.f32.gmra.mrb[24].mxu0 %vm720_vm4, %v682_v8  ;;  %v684_v15 = vmax.f32 %v570_v9, 0.0 }
 0x1cd   :  { %v683_v14 = vmax.f32 %v565_v12, 0.0  ;;  %v1373_v13 = vpop.f32.mrb[28].mxu1  ;;  %v1899_v12 = vld [vmem:[%s2067_s6] ss:$0 sm:$0xff] }
 0x1ce   :  { %v580_v16 = vadd.f32 %v1373_v13, %v1830_v41  ;;  %v574_v17 = vpop.f32.mrb[29].mxu1 }
 0x1cf   :  { %v575_v18 = vadd.f32 %v1830_v41, %v574_v17  ;;  %1432 = vmatprep.mubr.msk.f32.mxu0 %vm720_vm4, %v683_v14 }
 0x1d0   :  { %1433 = vmatmul.mubr.msk.f32.gmra.mrb[26].mxu0 %vm720_vm4, %v684_v15  ;;  %v686_v22 = vmax.f32 %v580_v16, 0.0 }
 0x1d1   :  { %v685_v20 = vmax.f32 %v575_v18, 0.0  ;;  %v1376_v21 = vpop.f32.mrb[30].mxu1 }
 0x1d2   :  { %v590_v11 = vadd.f32 %v1376_v21, %v1830_v41  ;;  %v584_v23 = vpop.f32.mrb[31].mxu1 }
 0x1d3   :  { %v585_v24 = vadd.f32 %v1830_v41, %v584_v23  ;;  %1435 = vmatprep.mubr.msk.f32.mxu0 %vm720_vm4, %v685_v20 }
 0x1d4   :  { %1436 = vmatmul.mubr.msk.f32.gmra.mrb[28].mxu0 %vm720_vm4, %v686_v22  ;;  %v688_v26 = vmax.f32 %v590_v11, 0.0 }
 0x1d5   :  { %v687_v25 = vmax.f32 %v585_v24, 0.0  ;;  %v1379_v19 = vpop.f32.mrb[32].mxu1 }
 0x1d6   :  { %v600_v28 = vadd.f32 %v1379_v19, %v1830_v41  ;;  %v594_v29 = vpop.f32.mrb[33].mxu1 }
 0x1d7   :  { %v595_v27 = vadd.f32 %v1830_v41, %v594_v29  ;;  %1438 = vmatprep.mubr.msk.f32.mxu0 %vm720_vm4, %v687_v25 }
 0x1d8   :  { %1439 = vmatmul.mubr.msk.f32.gmra.mrb[30].mxu0 %vm720_vm4, %v688_v26  ;;  %v690_v32 = vmax.f32 %v600_v28, 0.0 }
 0x1d9   :  { %v689_v30 = vmax.f32 %v595_v27, 0.0  ;;  %v1382_v31 = vpop.f32.mrb[34].mxu1 }
 0x1da   :  { %v610_v33 = vadd.f32 %v1382_v31, %v1830_v41  ;;  %v604_v34 = vpop.f32.mrb[35].mxu1 }
 0x1db   :  { %v605_v35 = vadd.f32 %v1830_v41, %v604_v34  ;;  %1441 = vmatprep.mubr.msk.f32.mxu0 %vm720_vm4, %v689_v30 }
 0x1dc   :  { %1442 = vmatmul.mubr.msk.f32.gmra.mrb[32].mxu0 %vm720_vm4, %v690_v32  ;;  %v692_v38 = vmax.f32 %v610_v33, 0.0 }
 0x1dd   :  { %v691_v36 = vmax.f32 %v605_v35, 0.0  ;;  %v1385_v37 = vpop.f32.mrb[36].mxu1 }
 0x1de   :  { %v620_v39 = vadd.f32 %v1385_v37, %v1830_v41  ;;  %v614_v40 = vpop.f32.mrb[37].mxu1 }
 0x1df   :  { %v615_v42 = vadd.f32 %v1830_v41, %v614_v40  ;;  %1444 = vmatprep.mubr.msk.f32.mxu0 %vm720_vm4, %v691_v36 }
 0x1e0   :  { %1445 = vmatmul.mubr.msk.f32.gmra.mrb[34].mxu0 %vm720_vm4, %v692_v38  ;;  %v694_v45 = vmax.f32 %v620_v39, 0.0 }
 0x1e1   :  { %v693_v43 = vmax.f32 %v615_v42, 0.0  ;;  %v1388_v44 = vpop.f32.mrb[38].mxu1 }
 0x1e2   :  { %v630_v46 = vadd.f32 %v1388_v44, %v1830_v41  ;;  %v624_v47 = vpop.f32.mrb[39].mxu1 }
 0x1e3   :  { %v625_v48 = vadd.f32 %v1830_v41, %v624_v47  ;;  %1447 = vmatprep.mubr.msk.f32.mxu0 %vm720_vm4, %v693_v43 }
 0x1e4   :  { %1448 = vmatmul.mubr.msk.f32.gmra.mrb[36].mxu0 %vm720_vm4, %v694_v45  ;;  %v696_v50 = vmax.f32 %v630_v46, 0.0 }
 0x1e5   :  { %v695_v7 = vmax.f32 %v625_v48, 0.0  ;;  %v1391_v49 = vpop.f32.mrb[40].mxu1 }
 0x1e6   :  { %v640_v51 = vadd.f32 %v1391_v49, %v1830_v41  ;;  %v634_v52 = vpop.f32.mrb[41].mxu1 }
 0x1e7   :  { %v635_v53 = vadd.f32 %v1830_v41, %v634_v52  ;;  %1450 = vmatprep.mubr.msk.f32.mxu0 %vm720_vm4, %v695_v7 }
 0x1e8   :  { %1451 = vmatmul.mubr.msk.f32.gmra.mrb[38].mxu0 %vm720_vm4, %v696_v50  ;;  %v698_v56 = vmax.f32 %v640_v51, 0.0 }
 0x1e9   :  { %v697_v54 = vmax.f32 %v635_v53, 0.0  ;;  %v1394_v55 = vpop.f32.mrb[42].mxu1 }
 0x1ea   :  { %v650_v57 = vadd.f32 %v1394_v55, %v1830_v41  ;;  %v644_v58 = vpop.f32.mrb[43].mxu1 }
 0x1eb   :  { %v645_v59 = vadd.f32 %v1830_v41, %v644_v58  ;;  %1453 = vmatprep.mubr.msk.f32.mxu0 %vm720_vm4, %v697_v54 }
 0x1ec   :  { %1454 = vmatmul.mubr.msk.f32.gmra.mrb[40].mxu0 %vm720_vm4, %v698_v56  ;;  %v700_v62 = vmax.f32 %v650_v57, 0.0 }
 0x1ed   :  { %v699_v60 = vmax.f32 %v645_v59, 0.0  ;;  %v1397_v61 = vpop.f32.mrb[44].mxu1 }
 0x1ee   :  { %v660_v63 = vadd.f32 %v1397_v61, %v1830_v41  ;;  %v654_v0 = vpop.f32.mrb[45].mxu1 }
 0x1ef   :  { %v655_v1 = vadd.f32 %v1830_v41, %v654_v0  ;;  %1456 = vmatprep.mubr.msk.f32.mxu0 %vm720_vm4, %v699_v60 }
 0x1f0   :  { %1457 = vmatmul.mubr.msk.f32.gmra.mrb[42].mxu0 %vm720_vm4, %v700_v62  ;;  %v702_v4 = vmax.f32 %v660_v63, 0.0 }
 0x1f1   :  { %v701_v2 = vmax.f32 %v655_v1, 0.0  ;;  %v1400_v3 = vpop.f32.mrb[46].mxu1 }
 0x1f2   :  { %v670_v5 = vadd.f32 %v1400_v3, %v1830_v41  ;;  %v664_v6 = vpop.f32.mrb[47].mxu1 }
 0x1f3   :  { %v665_v8 = vadd.f32 %v1830_v41, %v664_v6  ;;  %1459 = vmatprep.mubr.msk.f32.mxu0 %vm720_vm4, %v701_v2 }
 0x1f4   :  { %1460 = vmatmul.mubr.msk.f32.gmra.mrb[44].mxu0 %vm720_vm4, %v702_v4  ;;  %v704_v10 = vmax.f32 %v670_v5, 0.0 }
 0x1f5   :  { %v703_v9 = vmax.f32 %v665_v8, 0.0 }
 0x1f7   :  { %1462 = vmatprep.mubr.msk.f32.mxu0 %vm720_vm4, %v703_v9 }
 0x1f8   :  { %1463 = vmatmul.mubr.msk.f32.gmra.mrb[46].mxu0 %vm720_vm4, %v704_v10 }
 0x28f   :  { %v1419_v14 = vpop.f32.mrb[16].mxu0 }
 0x290   :  { %v889_v13 = vadd.f32 %v1419_v14, %v1899_v12  ;;  %v883_v41 = vpop.f32.mrb[17].mxu0 }
 0x291   :  { %v884_v15 = vadd.f32 %v1899_v12, %v883_v41 }
 0x292   :  { %1044 = vst.msk [vmem:[%s2068_s7 + $0x8] sm:$0xff] %vm1042_vm5, %v889_v13 }
 0x293   :  { %1043 = vst.msk [vmem:[%s2068_s7] sm:$0xff] %vm1042_vm5, %v884_v15  ;;  %v1422_v16 = vpop.f32.mrb[18].mxu0 }
 0x294   :  { %v899_v17 = vadd.f32 %v1422_v16, %v1899_v12  ;;  %v893_v18 = vpop.f32.mrb[19].mxu0 }
 0x295   :  { %v894_v20 = vadd.f32 %v1899_v12, %v893_v18 }
 0x296   :  { %1046 = vst.msk [vmem:[%s2068_s7 + $0x18] sm:$0xff] %vm1042_vm5, %v899_v17 }
 0x297   :  { %1045 = vst.msk [vmem:[%s2068_s7 + $0x10] sm:$0xff] %vm1042_vm5, %v894_v20  ;;  %v1425_v21 = vpop.f32.mrb[20].mxu0 }
 0x298   :  { %v909_v22 = vadd.f32 %v1425_v21, %v1899_v12  ;;  %v903_v11 = vpop.f32.mrb[21].mxu0 }
 0x299   :  { %v904_v23 = vadd.f32 %v1899_v12, %v903_v11 }
 0x29a   :  { %1048 = vst.msk [vmem:[%s2068_s7 + $0x28] sm:$0xff] %vm1042_vm5, %v909_v22 }
 0x29b   :  { %1047 = vst.msk [vmem:[%s2068_s7 + $0x20] sm:$0xff] %vm1042_vm5, %v904_v23  ;;  %v1428_v24 = vpop.f32.mrb[22].mxu0 }
 0x29c   :  { %v919_v25 = vadd.f32 %v1428_v24, %v1899_v12  ;;  %v913_v19 = vpop.f32.mrb[23].mxu0 }
 0x29d   :  { %v914_v26 = vadd.f32 %v1899_v12, %v913_v19 }
 0x29e   :  { %1050 = vst.msk [vmem:[%s2068_s7 + $0x38] sm:$0xff] %vm1042_vm5, %v919_v25 }
 0x29f   :  { %1049 = vst.msk [vmem:[%s2068_s7 + $0x30] sm:$0xff] %vm1042_vm5, %v914_v26  ;;  %v1431_v28 = vpop.f32.mrb[24].mxu0 }
 0x2a0   :  { %v929_v29 = vadd.f32 %v1431_v28, %v1899_v12  ;;  %v923_v27 = vpop.f32.mrb[25].mxu0 }
 0x2a1   :  { %v924_v30 = vadd.f32 %v1899_v12, %v923_v27 }
 0x2a2   :  { %1052 = vst.msk [vmem:[%s2068_s7 + $0x48] sm:$0xff] %vm1042_vm5, %v929_v29 }
 0x2a3   :  { %1051 = vst.msk [vmem:[%s2068_s7 + $0x40] sm:$0xff] %vm1042_vm5, %v924_v30  ;;  %v1434_v31 = vpop.f32.mrb[26].mxu0 }
 0x2a4   :  { %v939_v32 = vadd.f32 %v1434_v31, %v1899_v12  ;;  %v933_v33 = vpop.f32.mrb[27].mxu0 }
 0x2a5   :  { %v934_v34 = vadd.f32 %v1899_v12, %v933_v33 }
 0x2a6   :  { %1054 = vst.msk [vmem:[%s2068_s7 + $0x58] sm:$0xff] %vm1042_vm5, %v939_v32 }
 0x2a7   :  { %1053 = vst.msk [vmem:[%s2068_s7 + $0x50] sm:$0xff] %vm1042_vm5, %v934_v34  ;;  %v1437_v35 = vpop.f32.mrb[28].mxu0 }
 0x2a8   :  { %v949_v36 = vadd.f32 %v1437_v35, %v1899_v12  ;;  %v943_v37 = vpop.f32.mrb[29].mxu0 }
 0x2a9   :  { %v944_v38 = vadd.f32 %v1899_v12, %v943_v37 }
 0x2aa   :  { %1056 = vst.msk [vmem:[%s2068_s7 + $0x68] sm:$0xff] %vm1042_vm5, %v949_v36 }
 0x2ab   :  { %1055 = vst.msk [vmem:[%s2068_s7 + $0x60] sm:$0xff] %vm1042_vm5, %v944_v38  ;;  %v1440_v39 = vpop.f32.mrb[30].mxu0 }
 0x2ac   :  { %v959_v40 = vadd.f32 %v1440_v39, %v1899_v12  ;;  %v953_v42 = vpop.f32.mrb[31].mxu0 }
 0x2ad   :  { %v954_v43 = vadd.f32 %v1899_v12, %v953_v42 }
 0x2ae   :  { %1058 = vst.msk [vmem:[%s2068_s7 + $0x78] sm:$0xff] %vm1042_vm5, %v959_v40 }
 0x2af   :  { %1057 = vst.msk [vmem:[%s2068_s7 + $0x70] sm:$0xff] %vm1042_vm5, %v954_v43  ;;  %v1443_v44 = vpop.f32.mrb[32].mxu0 }
 0x2b0   :  { %v969_v45 = vadd.f32 %v1443_v44, %v1899_v12  ;;  %v963_v46 = vpop.f32.mrb[33].mxu0 }
 0x2b1   :  { %v964_v47 = vadd.f32 %v1899_v12, %v963_v46 }
 0x2b2   :  { %1060 = vst.msk [vmem:[%s2068_s7 + $0x88] sm:$0xff] %vm1042_vm5, %v969_v45 }
 0x2b3   :  { %1059 = vst.msk [vmem:[%s2068_s7 + $0x80] sm:$0xff] %vm1042_vm5, %v964_v47  ;;  %v1446_v48 = vpop.f32.mrb[34].mxu0 }
 0x2b4   :  { %v979_v7 = vadd.f32 %v1446_v48, %v1899_v12  ;;  %v973_v49 = vpop.f32.mrb[35].mxu0 }
 0x2b5   :  { %v974_v50 = vadd.f32 %v1899_v12, %v973_v49 }
 0x2b6   :  { %1062 = vst.msk [vmem:[%s2068_s7 + $0x98] sm:$0xff] %vm1042_vm5, %v979_v7 }
 0x2b7   :  { %1061 = vst.msk [vmem:[%s2068_s7 + $0x90] sm:$0xff] %vm1042_vm5, %v974_v50  ;;  %v1449_v51 = vpop.f32.mrb[36].mxu0 }
 0x2b8   :  { %v989_v52 = vadd.f32 %v1449_v51, %v1899_v12  ;;  %v983_v53 = vpop.f32.mrb[37].mxu0 }
 0x2b9   :  { %v984_v54 = vadd.f32 %v1899_v12, %v983_v53 }
 0x2ba   :  { %1064 = vst.msk [vmem:[%s2068_s7 + $0xa8] sm:$0xff] %vm1042_vm5, %v989_v52 }
 0x2bb   :  { %1063 = vst.msk [vmem:[%s2068_s7 + $0xa0] sm:$0xff] %vm1042_vm5, %v984_v54  ;;  %v1452_v55 = vpop.f32.mrb[38].mxu0 }
 0x2bc   :  { %v999_v56 = vadd.f32 %v1452_v55, %v1899_v12  ;;  %v993_v57 = vpop.f32.mrb[39].mxu0 }
 0x2bd   :  { %v994_v58 = vadd.f32 %v1899_v12, %v993_v57 }
 0x2be   :  { %1066 = vst.msk [vmem:[%s2068_s7 + $0xb8] sm:$0xff] %vm1042_vm5, %v999_v56 }
 0x2bf   :  { %1065 = vst.msk [vmem:[%s2068_s7 + $0xb0] sm:$0xff] %vm1042_vm5, %v994_v58  ;;  %v1455_v59 = vpop.f32.mrb[40].mxu0 }
 0x2c0   :  { %v1009_v60 = vadd.f32 %v1455_v59, %v1899_v12  ;;  %v1003_v61 = vpop.f32.mrb[41].mxu0 }
 0x2c1   :  { %v1004_v62 = vadd.f32 %v1899_v12, %v1003_v61 }
 0x2c2   :  { %1068 = vst.msk [vmem:[%s2068_s7 + $0xc8] sm:$0xff] %vm1042_vm5, %v1009_v60 }
 0x2c3   :  { %1067 = vst.msk [vmem:[%s2068_s7 + $0xc0] sm:$0xff] %vm1042_vm5, %v1004_v62  ;;  %v1458_v63 = vpop.f32.mrb[42].mxu0 }
 0x2c4   :  { %v1019_v0 = vadd.f32 %v1458_v63, %v1899_v12  ;;  %v1013_v1 = vpop.f32.mrb[43].mxu0 }
 0x2c5   :  { %v1014_v2 = vadd.f32 %v1899_v12, %v1013_v1 }
 0x2c6   :  { %1070 = vst.msk [vmem:[%s2068_s7 + $0xd8] sm:$0xff] %vm1042_vm5, %v1019_v0 }
 0x2c7   :  { %1069 = vst.msk [vmem:[%s2068_s7 + $0xd0] sm:$0xff] %vm1042_vm5, %v1014_v2  ;;  %v1461_v3 = vpop.f32.mrb[44].mxu0 }
 0x2c8   :  { %v1029_v4 = vadd.f32 %v1461_v3, %v1899_v12  ;;  %v1023_v5 = vpop.f32.mrb[45].mxu0 }
 0x2c9   :  { %v1024_v6 = vadd.f32 %v1899_v12, %v1023_v5 }
 0x2ca   :  { %1072 = vst.msk [vmem:[%s2068_s7 + $0xe8] sm:$0xff] %vm1042_vm5, %v1029_v4 }
 0x2cb   :  { %1071 = vst.msk [vmem:[%s2068_s7 + $0xe0] sm:$0xff] %vm1042_vm5, %v1024_v6  ;;  %v1464_v8 = vpop.f32.mrb[46].mxu0 }
 0x2cc   :  { %v1039_v9 = vadd.f32 %v1464_v8, %v1899_v12  ;;  %v1033_v10 = vpop.f32.mrb[47].mxu0 }
 0x2cd   :  { %v1034_v14 = vadd.f32 %v1899_v12, %v1033_v10 }
 0x2ce   :  { %1074 = vst.msk [vmem:[%s2068_s7 + $0xf8] sm:$0xff] %vm1042_vm5, %v1039_v9 }
 0x2cf   :  { %1073 = vst.msk [vmem:[%s2068_s7 + $0xf0] sm:$0xff] %vm1042_vm5, %v1034_v14 }

</bundles_post_ra>
